<compile_context>
chip_gen: v7x
topology: tpu7x:2x2x1
jax: 0.10.0
libtpu: 0.0.40
codegen_flags: <defaults>
</compile_context>

<pallas_src>
import functools

import jax
import jax.numpy as jnp
from jax.experimental import pallas as pl
from jax.experimental.pallas import tpu as pltpu


def _elu(x):
    # ELU(alpha=1): x if x > 0 else exp(x) - 1; min() keeps exp() finite.
    return jnp.where(x > 0, x, jnp.exp(jnp.minimum(x, 0.0)) - 1.0)


def _residual_unit_kernel(x_ref, w1_ref, b1_ref, w2_ref, b2_ref, o_ref,
                          xbuf_ref, xstack_ref, *,
                          K, dilation, pad, pad_al, tile_t, carry_halo):
    # x_ref     : (1, C, tile_t)        current T tile (T on lanes)
    # w1_ref    : (C, K*C)              fused dilated-conv weight [o, k*C + i]
    # b1_ref    : (C, 1)
    # w2_ref    : (C, C)                1x1 conv weight [o, i]
    # b2_ref    : (C, 1)
    # o_ref     : (1, C, tile_t)
    # xbuf_ref  : (C, pad_al + tile_t)  persistent window: [... halo | tile]
    # xstack_ref: (K*C, tile_t)         im2col tap stack for the fused matmul
    j = pl.program_id(1)
    C = x_ref.shape[1]

    xcur = x_ref[0, :, :]                                  # (C, tile_t) f32

    if pad > 0:
        @pl.when(j == 0)
        def _():
            # First T tile of this batch row: causal left context is zero.
            xbuf_ref[:, pad_al - pad:pad_al] = jnp.zeros((C, pad), jnp.float32)

    # Lane-aligned store of the current tile into the persistent window.
    xbuf_ref[:, pad_al:] = xcur

    # --- CausalConv1d(K, dilation): write each dilated tap once, then one
    # fused MXU matmul over the K*C contraction dimension. ---
    for k in range(K):
        off = pad_al - pad + k * dilation
        xstack_ref[k * C:(k + 1) * C, :] = xbuf_ref[:, off:off + tile_t]

    h = jnp.dot(w1_ref[...], xstack_ref[...],
                preferred_element_type=jnp.float32)        # (C, tile_t)
    h = _elu(h + b1_ref[...])

    # --- CausalConv1d(kernel_size=1): pointwise matmul ---
    h2 = jnp.dot(w2_ref[...], h, preferred_element_type=jnp.float32)
    h2 = _elu(h2 + b2_ref[...])

    # --- residual add; lane-dense store (masked on the partial last block) --
    o_ref[0, :, :] = (h2 + xcur).astype(o_ref.dtype)

    if carry_halo:
        # Carry the last `pad` columns of this tile as the next tile's halo.
        xbuf_ref[:, pad_al - pad:pad_al] = xbuf_ref[:, pad_al + tile_t - pad:]


def _vmem_capacity_bytes():
    try:
        return int(pltpu.get_tpu_info().vmem_capacity_bytes)
    except Exception:
        return 64 << 20  # conservative fallback: v7x per-TensorCore VMEM


def residual_unit(x_bct, w1, b1, w2, b2, *, dilation, tile_t_target=8192):
    """x_bct: (B, C, T) float32 (PyTorch NCW layout). Returns (B, C, T).

    w1: (K, C_in, C_out) == torch conv1.weight[o, i, k] transposed -> w1[k, i, o]
    b1: (C,)             w2: (C_in, C_out) == torch conv2.weight[:, :, 0].T
    """
    B, C, T = x_bct.shape
    K = w1.shape[0]
    pad = (K - 1) * dilation
    pad_al = (-(-pad // 128)) * 128 if pad > 0 else 0    # lane-aligned halo area

    # Weight/bias repacking (tiny tensors, done once).
    w1m = jnp.transpose(w1, (2, 0, 1)).reshape(C, K * C)  # [o, k*C + i]
    w2m = jnp.transpose(w2, (1, 0))                       # [o, i]
    b1c = b1.reshape(C, 1)
    b2c = b2.reshape(C, 1)

    # --- T tiling: large lane-dense tiles sized from a VMEM budget ----------
    # Per-step VMEM ~ 4*C*tile_t*(K + 8) bytes: in/out double buffers (2+2),
    # window scratch (1), K-tap stack (K), plus ~3 tiles of f32 temporaries.
    cap = _vmem_capacity_bytes()
    budget = min(cap // 2, 48 << 20)
    per_col = 4 * C * (K + 8)
    max_tt = max(128, (budget // per_col) // 128 * 128)
    tile_t = min(max(128, (tile_t_target // 128) * 128), max_tt)
    tile_t = max(tile_t, (-(-pad // 128)) * 128 if pad > 0 else 128)

    if T <= tile_t:
        tile_t, nt = T, 1           # single full-T block (full-dim block OK)
    else:
        nt = pl.cdiv(T, tile_t)     # last block may be partial; no wrapper pad

    ws = per_col * tile_t + 4 * C * pad_al
    vmem_limit = int(min(cap - (4 << 20), max(2 * ws, 32 << 20)))

    kernel = functools.partial(
        _residual_unit_kernel, K=K, dilation=dilation, pad=pad, pad_al=pad_al,
        tile_t=tile_t, carry_halo=(nt > 1 and pad > 0))

    out = pl.pallas_call(
        kernel,
        out_shape=jax.ShapeDtypeStruct((B, C, T), jnp.float32),
        grid=(B, nt),
        in_specs=[
            pl.BlockSpec((1, C, tile_t), lambda b, j: (b, 0, j)),   # x
            pl.BlockSpec((C, K * C),     lambda b, j: (0, 0)),      # w1 fused
            pl.BlockSpec((C, 1),         lambda b, j: (0, 0)),      # b1
            pl.BlockSpec((C, C),         lambda b, j: (0, 0)),      # w2
            pl.BlockSpec((C, 1),         lambda b, j: (0, 0)),      # b2
        ],
        out_specs=pl.BlockSpec((1, C, tile_t), lambda b, j: (b, 0, j)),
        scratch_shapes=[
            pltpu.VMEM((C, pad_al + tile_t), jnp.float32),  # persistent window
            pltpu.VMEM((K * C, tile_t), jnp.float32),       # im2col tap stack
        ],
        compiler_params=pltpu.CompilerParams(
            # B shards across TensorCores; T must stay sequential because the
            # causal halo is carried across T tiles in scratch.
            dimension_semantics=("parallel", "arbitrary"),
            vmem_limit_bytes=vmem_limit),
    )(x_bct, w1m, b1c, w2m, b2c)
    return out


def _reference(x_bct, w1, b1, w2, b2, *, dilation):
    """Pure-JAX reference with identical semantics (tap-sum formulation)."""
    B, C, T = x_bct.shape
    K = w1.shape[0]
    pad = (K - 1) * dilation
    x_btc = jnp.transpose(x_bct, (0, 2, 1))
    x_pad = jnp.pad(x_btc, ((0, 0), (pad, 0), (0, 0)))
    h = jnp.zeros((B, T, C), jnp.float32)
    for k in range(K):
        h = h + jnp.einsum("bti,io->bto",
                           x_pad[:, k * dilation:k * dilation + T, :], w1[k])
    h = jax.nn.elu(h + b1)
    h = jax.nn.elu(jnp.einsum("bti,io->bto", h, w2) + b2)
    return jnp.transpose(h + x_btc, (0, 2, 1))


if __name__ == "__main__":
    # Small, module-consistent shapes: batch=2, channels=8, seq=16,
    # kernel_size=7, dilation=2.
    B, C, T = 2, 8, 16
    K, dilation = 7, 2

    key = jax.random.PRNGKey(0)
    kx, kw1, kb1, kw2, kb2 = jax.random.split(key, 5)

    x = jax.random.normal(kx, (B, C, T), dtype=jnp.float32)
    # w1[k, i, o] corresponds to torch conv1.weight[o, i, k];
    # w2[i, o] corresponds to torch conv2.weight[o, i, 0].
    w1 = 0.1 * jax.random.normal(kw1, (K, C, C), dtype=jnp.float32)
    b1 = 0.1 * jax.random.normal(kb1, (C,), dtype=jnp.float32)
    w2 = 0.1 * jax.random.normal(kw2, (C, C), dtype=jnp.float32)
    b2 = 0.1 * jax.random.normal(kb2, (C,), dtype=jnp.float32)

    # 1) Single-tile path (T <= tile_t): full-T block.
    out = jax.block_until_ready(
        residual_unit(x, w1, b1, w2, b2, dilation=dilation))
    ref = _reference(x, w1, b1, w2, b2, dilation=dilation)
    assert out.shape == (B, C, T)
    assert jnp.allclose(out, ref, atol=1e-5, rtol=1e-5), "mismatch (single tile)"

    # 2) Tiled path: multi-step grid, halo carry, partial last block
    #    (no wrapper padding).
    T2 = 1300
    x2 = jax.random.normal(jax.random.PRNGKey(1), (B, C, T2), dtype=jnp.float32)
    ref2 = _reference(x2, w1, b1, w2, b2, dilation=dilation)
    out2 = jax.block_until_ready(
        residual_unit(x2, w1, b1, w2, b2, dilation=dilation, tile_t_target=512))
    assert out2.shape == (B, C, T2)
    assert jnp.allclose(out2, ref2, atol=2e-5, rtol=1e-5), "mismatch (tiled)"

    # 3) Default (large-tile) config on the same longer input.
    out3 = jax.block_until_ready(
        residual_unit(x2, w1, b1, w2, b2, dilation=dilation))
    assert jnp.allclose(out3, ref2, atol=2e-5, rtol=1e-5), "mismatch (default)"

    print("KERNEL_OK")
</pallas_src>

<mosaic_0001>
module attributes {stable_mosaic.version = 11 : i64} {
  func.func @_residual_unit_kernel(%arg0: i32, %arg1: i32, %arg2: memref<1x8x16xf32, #tpu.memory_space<vmem>>, %arg3: memref<8x56xf32, #tpu.memory_space<vmem>>, %arg4: memref<8x1xf32, #tpu.memory_space<vmem>>, %arg5: memref<8x8xf32, #tpu.memory_space<vmem>>, %arg6: memref<8x1xf32, #tpu.memory_space<vmem>>, %arg7: memref<1x8x16xf32, #tpu.memory_space<vmem>>, %arg8: memref<8x144xf32, #tpu.memory_space<vmem>>, %arg9: memref<56x16xf32, #tpu.memory_space<vmem>>) attributes {dimension_semantics = [#tpu.dimension_semantics<parallel>, #tpu.dimension_semantics<arbitrary>], iteration_bounds = array<i64: 2, 1>, scalar_prefetch = 0 : i64, scratch_operands = 2 : i64, tpu.core_type = #tpu.core_type<tc>, window_params = [{transform_indices = @transform_0, window_bounds = array<i64: 1, 8, 16>}, {pipeline_mode = #tpu.pipeline_mode<synchronous>, transform_indices = @transform_1, window_bounds = array<i64: 8, 56>}, {pipeline_mode = #tpu.pipeline_mode<synchronous>, transform_indices = @transform_2, window_bounds = array<i64: 8, 1>}, {pipeline_mode = #tpu.pipeline_mode<synchronous>, transform_indices = @transform_3, window_bounds = array<i64: 8, 8>}, {pipeline_mode = #tpu.pipeline_mode<synchronous>, transform_indices = @transform_4, window_bounds = array<i64: 8, 1>}, {transform_indices = @transform_5, window_bounds = array<i64: 1, 8, 16>}]} {
    %c0 = arith.constant 0 : index
    %c0_0 = arith.constant 0 : index
    %c0_1 = arith.constant 0 : index
    %0 = vector.load %arg2[%c0, %c0_0, %c0_1] : memref<1x8x16xf32, #tpu.memory_space<vmem>>, vector<1x8x16xf32>
    %1 = vector.shape_cast %0 : vector<1x8x16xf32> to vector<8x16xf32>
    %c0_i32 = arith.constant 0 : i32
    %2 = arith.cmpi eq, %arg1, %c0_i32 : i32
    %3 = arith.extui %2 : i1 to i32
    %c0_i32_2 = arith.constant 0 : i32
    %4 = arith.cmpi ne, %3, %c0_i32_2 : i32
    scf.if %4 {
      %cst_40 = arith.constant 0.000000e+00 : f32
      %51 = vector.broadcast %cst_40 : f32 to vector<8x12xf32>
      %c0_41 = arith.constant 0 : index
      %c116_42 = arith.constant 116 : index
      %52 = vector.load %arg8[%c0_41, %c116_42] : memref<8x144xf32, #tpu.memory_space<vmem>>, vector<8x12xf32>
      tpu.vector_store %arg8[%c0_41, %c116_42], %51 {strides = array<i32>} : memref<8x144xf32, #tpu.memory_space<vmem>>, vector<8x12xf32>,
    } else {
    }
    %c0_3 = arith.constant 0 : index
    %c128 = arith.constant 128 : index
    %5 = vector.load %arg8[%c0_3, %c128] : memref<8x144xf32, #tpu.memory_space<vmem>>, vector<8x16xf32>
    tpu.vector_store %arg8[%c0_3, %c128], %1 {strides = array<i32>} : memref<8x144xf32, #tpu.memory_space<vmem>>, vector<8x16xf32>,
    %c0_4 = arith.constant 0 : index
    %c116 = arith.constant 116 : index
    %6 = vector.load %arg8[%c0_4, %c116] : memref<8x144xf32, #tpu.memory_space<vmem>>, vector<8x16xf32>
    %c0_5 = arith.constant 0 : index
    %c0_6 = arith.constant 0 : index
    %7 = vector.load %arg9[%c0_5, %c0_6] : memref<56x16xf32, #tpu.memory_space<vmem>>, vector<8x16xf32>
    tpu.vector_store %arg9[%c0_5, %c0_6], %6 {strides = array<i32>} : memref<56x16xf32, #tpu.memory_space<vmem>>, vector<8x16xf32>,
    %c0_7 = arith.constant 0 : index
    %c118 = arith.constant 118 : index
    %8 = vector.load %arg8[%c0_7, %c118] : memref<8x144xf32, #tpu.memory_space<vmem>>, vector<8x16xf32>
    %c8 = arith.constant 8 : index
    %c0_8 = arith.constant 0 : index
    %9 = vector.load %arg9[%c8, %c0_8] : memref<56x16xf32, #tpu.memory_space<vmem>>, vector<8x16xf32>
    tpu.vector_store %arg9[%c8, %c0_8], %8 {strides = array<i32>} : memref<56x16xf32, #tpu.memory_space<vmem>>, vector<8x16xf32>,
    %c0_9 = arith.constant 0 : index
    %c120 = arith.constant 120 : index
    %10 = vector.load %arg8[%c0_9, %c120] : memref<8x144xf32, #tpu.memory_space<vmem>>, vector<8x16xf32>
    %c16 = arith.constant 16 : index
    %c0_10 = arith.constant 0 : index
    %11 = vector.load %arg9[%c16, %c0_10] : memref<56x16xf32, #tpu.memory_space<vmem>>, vector<8x16xf32>
    tpu.vector_store %arg9[%c16, %c0_10], %10 {strides = array<i32>} : memref<56x16xf32, #tpu.memory_space<vmem>>, vector<8x16xf32>,
    %c0_11 = arith.constant 0 : index
    %c122 = arith.constant 122 : index
    %12 = vector.load %arg8[%c0_11, %c122] : memref<8x144xf32, #tpu.memory_space<vmem>>, vector<8x16xf32>
    %c24 = arith.constant 24 : index
    %c0_12 = arith.constant 0 : index
    %13 = vector.load %arg9[%c24, %c0_12] : memref<56x16xf32, #tpu.memory_space<vmem>>, vector<8x16xf32>
    tpu.vector_store %arg9[%c24, %c0_12], %12 {strides = array<i32>} : memref<56x16xf32, #tpu.memory_space<vmem>>, vector<8x16xf32>,
    %c0_13 = arith.constant 0 : index
    %c124 = arith.constant 124 : index
    %14 = vector.load %arg8[%c0_13, %c124] : memref<8x144xf32, #tpu.memory_space<vmem>>, vector<8x16xf32>
    %c32 = arith.constant 32 : index
    %c0_14 = arith.constant 0 : index
    %15 = vector.load %arg9[%c32, %c0_14] : memref<56x16xf32, #tpu.memory_space<vmem>>, vector<8x16xf32>
    tpu.vector_store %arg9[%c32, %c0_14], %14 {strides = array<i32>} : memref<56x16xf32, #tpu.memory_space<vmem>>, vector<8x16xf32>,
    %c0_15 = arith.constant 0 : index
    %c126 = arith.constant 126 : index
    %16 = vector.load %arg8[%c0_15, %c126] : memref<8x144xf32, #tpu.memory_space<vmem>>, vector<8x16xf32>
    %c40 = arith.constant 40 : index
    %c0_16 = arith.constant 0 : index
    %17 = vector.load %arg9[%c40, %c0_16] : memref<56x16xf32, #tpu.memory_space<vmem>>, vector<8x16xf32>
    tpu.vector_store %arg9[%c40, %c0_16], %16 {strides = array<i32>} : memref<56x16xf32, #tpu.memory_space<vmem>>, vector<8x16xf32>,
    %c0_17 = arith.constant 0 : index
    %c128_18 = arith.constant 128 : index
    %18 = vector.load %arg8[%c0_17, %c128_18] : memref<8x144xf32, #tpu.memory_space<vmem>>, vector<8x16xf32>
    %c48 = arith.constant 48 : index
    %c0_19 = arith.constant 0 : index
    %19 = vector.load %arg9[%c48, %c0_19] : memref<56x16xf32, #tpu.memory_space<vmem>>, vector<8x16xf32>
    tpu.vector_store %arg9[%c48, %c0_19], %18 {strides = array<i32>} : memref<56x16xf32, #tpu.memory_space<vmem>>, vector<8x16xf32>,
    %c0_20 = arith.constant 0 : index
    %c0_21 = arith.constant 0 : index
    %20 = vector.load %arg3[%c0_20, %c0_21] : memref<8x56xf32, #tpu.memory_space<vmem>>, vector<8x56xf32>
    %c0_22 = arith.constant 0 : index
    %c0_23 = arith.constant 0 : index
    %21 = vector.load %arg9[%c0_22, %c0_23] : memref<56x16xf32, #tpu.memory_space<vmem>>, vector<56x16xf32>
    %cst = arith.constant dense<0.000000e+00> : vector<8x16xf32>
    %22 = tpu.matmul %20, %21, %cst {dimension_numbers = #tpu.dot_dimension_numbers<[1], [0], [0], [1], [0, 0, 1, 1], [], []>} : vector<8x56xf32>, vector<56x16xf32>, vector<8x16xf32> -> vector<8x16xf32>
    %c0_24 = arith.constant 0 : index
    %c0_25 = arith.constant 0 : index
    %23 = vector.load %arg4[%c0_24, %c0_25] : memref<8x1xf32, #tpu.memory_space<vmem>>, vector<8x1xf32>
    %24 = vector.broadcast %23 : vector<8x1xf32> to vector<8x16xf32>
    %25 = arith.addf %22, %24 : vector<8x16xf32>
    %cst_26 = arith.constant 0.000000e+00 : f32
    %26 = vector.broadcast %cst_26 : f32 to vector<8x16xf32>
    %27 = arith.cmpf ogt, %25, %26 : vector<8x16xf32>
    %cst_27 = arith.constant 0.000000e+00 : f32
    %28 = vector.broadcast %cst_27 : f32 to vector<8x16xf32>
    %29 = arith.minimumf %25, %28 : vector<8x16xf32>
    %30 = math.exp %29 : vector<8x16xf32>
    %cst_28 = arith.constant 1.000000e+00 : f32
    %31 = vector.broadcast %cst_28 : f32 to vector<8x16xf32>
    %32 = arith.subf %30, %31 : vector<8x16xf32>
    %33 = arith.select %27, %25, %32 : vector<8x16xi1>, vector<8x16xf32>
    %c0_29 = arith.constant 0 : index
    %c0_30 = arith.constant 0 : index
    %34 = vector.load %arg5[%c0_29, %c0_30] : memref<8x8xf32, #tpu.memory_space<vmem>>, vector<8x8xf32>
    %cst_31 = arith.constant dense<0.000000e+00> : vector<8x16xf32>
    %35 = tpu.matmul %34, %33, %cst_31 {dimension_numbers = #tpu.dot_dimension_numbers<[1], [0], [0], [1], [0, 0, 1, 1], [], []>} : vector<8x8xf32>, vector<8x16xf32>, vector<8x16xf32> -> vector<8x16xf32>
    %c0_32 = arith.constant 0 : index
    %c0_33 = arith.constant 0 : index
    %36 = vector.load %arg6[%c0_32, %c0_33] : memref<8x1xf32, #tpu.memory_space<vmem>>, vector<8x1xf32>
    %37 = vector.broadcast %36 : vector<8x1xf32> to vector<8x16xf32>
    %38 = arith.addf %35, %37 : vector<8x16xf32>
    %cst_34 = arith.constant 0.000000e+00 : f32
    %39 = vector.broadcast %cst_34 : f32 to vector<8x16xf32>
    %40 = arith.cmpf ogt, %38, %39 : vector<8x16xf32>
    %cst_35 = arith.constant 0.000000e+00 : f32
    %41 = vector.broadcast %cst_35 : f32 to vector<8x16xf32>
    %42 = arith.minimumf %38, %41 : vector<8x16xf32>
    %43 = math.exp %42 : vector<8x16xf32>
    %cst_36 = arith.constant 1.000000e+00 : f32
    %44 = vector.broadcast %cst_36 : f32 to vector<8x16xf32>
    %45 = arith.subf %43, %44 : vector<8x16xf32>
    %46 = arith.select %40, %38, %45 : vector<8x16xi1>, vector<8x16xf32>
    %47 = arith.addf %46, %1 : vector<8x16xf32>
    %c0_37 = arith.constant 0 : index
    %c0_38 = arith.constant 0 : index
    %c0_39 = arith.constant 0 : index
    %48 = vector.load %arg7[%c0_37, %c0_38, %c0_39] : memref<1x8x16xf32, #tpu.memory_space<vmem>>, vector<1x8x16xf32>
    %49 = vector.shape_cast %48 : vector<1x8x16xf32> to vector<8x16xf32>
    %50 = vector.shape_cast %47 : vector<8x16xf32> to vector<1x8x16xf32>
    tpu.vector_store %arg7[%c0_37, %c0_38, %c0_39], %50 {strides = array<i32>} : memref<1x8x16xf32, #tpu.memory_space<vmem>>, vector<1x8x16xf32>,
    return
  }
  func.func @transform_0(%arg0: i32, %arg1: i32) -> (i32, i32, i32) {
    %c0_i32 = arith.constant 0 : i32
    %c0_i32_0 = arith.constant 0 : i32
    return %arg0, %c0_i32, %arg1 : i32, i32, i32
  }
  func.func @transform_1(%arg0: i32, %arg1: i32) -> (i32, i32) {
    %c0_i32 = arith.constant 0 : i32
    %c0_i32_0 = arith.constant 0 : i32
    %c0_i32_1 = arith.constant 0 : i32
    return %c0_i32, %c0_i32_0 : i32, i32
  }
  func.func @transform_2(%arg0: i32, %arg1: i32) -> (i32, i32) {
    %c0_i32 = arith.constant 0 : i32
    %c0_i32_0 = arith.constant 0 : i32
    %c0_i32_1 = arith.constant 0 : i32
    return %c0_i32, %c0_i32_0 : i32, i32
  }
  func.func @transform_3(%arg0: i32, %arg1: i32) -> (i32, i32) {
    %c0_i32 = arith.constant 0 : i32
    %c0_i32_0 = arith.constant 0 : i32
    %c0_i32_1 = arith.constant 0 : i32
    return %c0_i32, %c0_i32_0 : i32, i32
  }
  func.func @transform_4(%arg0: i32, %arg1: i32) -> (i32, i32) {
    %c0_i32 = arith.constant 0 : i32
    %c0_i32_0 = arith.constant 0 : i32
    %c0_i32_1 = arith.constant 0 : i32
    return %c0_i32, %c0_i32_0 : i32, i32
  }
  func.func @transform_5(%arg0: i32, %arg1: i32) -> (i32, i32, i32) {
    %c0_i32 = arith.constant 0 : i32
    %c0_i32_0 = arith.constant 0 : i32
    return %arg0, %c0_i32, %arg1 : i32, i32, i32
  }
}

</mosaic_0001>

<bundles_post_ra>
// kernel: tpu_custom_call.1
= control target key start
LH: loop header
LB: loop body
LE: loop exit
PB: predicated region body
PF: predicated region fallthrough
CT: control target
= control target key end

     0   :  { %10 = vsyncpa [#allocation5], 0  ;;  %s1094_s0 = inlined_call_operand.vmem [shape: f32[2,8,16], index: 0, kind: input, shape index: {}]   ;;  %s1095_s1 = inlined_call_operand.hbm [shape: f32[8,56], index: 1, kind: input, shape index: {}]   ;;  %s1096_s2 = inlined_call_operand.vmem [shape: f32[8,1], index: 2, kind: input, shape index: {}]   ;;  %s1097_s3 = inlined_call_operand.vmem [shape: f32[8,8], index: 3, kind: input, shape index: {}]   ;;  %s1098_s4 = inlined_call_operand.vmem [shape: f32[8,1], index: 4, kind: input, shape index: {}]   ;;  %s1099_s5 = inlined_call_operand.hbm [shape: f32[2,8,16], index: 5, kind: output, shape index: {}]  }
   0x1   :  { %11 = vsyncpa [#allocation6], 0 }
   0x2   :  { %13 = vsyncpa [#allocation6 + $0x1], 0  ;;  %s915_s18 = smov 0   ;;  %s917_s19 = smov 0  }
   0x3   :  { %s919_s20 = smov 0   ;;  %s921_s21 = smov 0  }
   0x4   :  { %s923_s22 = smov 0   ;;  %s925_s23 = smov 0  }
   0x5 LB: > { %s621_s24 = sadd.s32 4294967295, %s871_s23   ;;  %s622_s25 = sadd.s32 4294967294, %s871_s23   ;;  %s871_s23 = sphi %s925_s23, %s19_s23   ;;  %s867_s22 = sphi %s923_s22, %s1117_s22   ;;  %s863_s21 = sphi %s921_s21, %s1116_s21   ;;  %s859_s20 = sphi %s919_s20, %s1115_s20   ;;  %s855_s19 = sphi %s917_s19, %s1114_s19   ;;  %s851_s18 = sphi %s915_s18, %s1113_s18  }
   0x6   : > { %s31_s26 = sadd.s32 1, %s867_s22  ;;  %s152_s27 = sadd.s32 1, %s859_s20 }
   0x7   : > { %p33_p0 = scmp.ge.s32.totalorder %s31_s26, 2  ;;  %p162_p1 = scmp.ne.s32.totalorder %s859_s20, %s855_s19 }
   0x8   : > { %p163_p2 = scmp.eq.s32.totalorder %s621_s24, 1  ;;  %p168_p3 = scmp.ne.s32.totalorder %s855_s19, %s851_s18 }
   0x9   : > { %s1119_s26 = smov (%p33_p0, %s31_s26), 0  ;;  %p169_p5 = scmp.eq.s32.totalorder %s622_s25, 1 }
   0xa   : > { %p955_p4 = por %p163_p2, %p162_p1  ;;  %s147_s29 = ssub.s32 %s867_s22, %s1119_s26 }
   0xb   : > { %p623_p6 = scmp.ge.s32.totalorder %s871_s23, 1  ;;  %p150_p7 = scmp.eq.s32.totalorder %s147_s29, 0 }
   0xc   : > { %s1104_s28 = scalar_select %p955_p4, 1, 0 }
   0xd   : > { %p962_p8 = por %p169_p5, %p168_p3  ;;  %p176_p9 = scmp.lt.s32.totalorder %s871_s23, 3 }
   0xe   : > { %s968_s6 = scalar_select %p150_p7, %s859_s20, %s152_s27  }
   0xf   : > { %s1105_s30 = scalar_select %p962_p8, 1, 0 }
  0x10   : > { %p970_p10 = pnand %p623_p6, %p176_p9  ;;  %p974_p11 = scmp.eq.s32.totalorder %s621_s24, 0 }
  0x11   : > { %s873_s9 = smov [#allocation4]   ;;  %s761_s14 = scalar_lea.hbm %s1095_s1, 128 }
  0x12   : > { %s1106_s7 = scalar_select %p970_p10, 1, 0 }
  0x13   : > { %s1107_s8 = scalar_select %p974_p11, 1, 0 }
  0x14   : > { %p685_p12 = pneg %p970_p10  ;;  %s189_s10 = sshll.u32 %s873_s9, 4  ;;  %s190_s10 = int_to_ptr.vmem [resolvable:$true] %s189_s10 }
  0x15   : > { %p762_p0 = scmp.ne.s32.totalorder %s1095_s1, %s761_s14  ;;  %p768_p5 = scmp.lt.u32.totalorder %s761_s14, %s1095_s1 }
  0x16   : > { %p982_p13 = pnand %p974_p11, %p685_p12 }
  0x18   : > { %p763_p1 = pneg %p982_p13 }
  0x1a   : > { %p764_p2 = pnand %p763_p1, %p762_p0 }
  0x1c   : > { %p765_p3 = pneg %p764_p2 }
  0x1e   : > { %p770_p6 = pnand %p768_p5, %p765_p3 }
  0x20   : > { %773 = shalt.err (!%p770_p6)
}
  0x21   : > { %s774_s25 = scalar_lea.vmem %s190_s10, 128  ;;  %p782_p8 = scmp.lt.s32.totalorder %s190_s10, %s190_s10 }
  0x22   : > { %p775_p7 = scmp.ne.s32.totalorder %s190_s10, %s774_s25  ;;  %p783_p4 = scmp.lt.s32.totalorder %s774_s25, %s774_s25 }
  0x24   : > { %p777_p9 = pnand %p775_p7, %p763_p1  ;;  %p784_p11 = por %p783_p4, %p782_p8 }
  0x26   : > { %p778_p12 = pneg %p777_p9 }
  0x28   : > { %p785_p10 = pnand %p784_p11, %p778_p12 }
  0x2a   : > { %788 = shalt.err (!%p785_p10)
}
  0x2b   : > { %688 = dma.hbm_to_vmem [thread:$0]  (!%p982_p13), %s1095_s1, 128, %s190_s10, [#allocation5]  }
  0x2c   : > { %p1109_p0 = scmp.ne.s32.totalorder %s1106_s7, 0 }
  0x2d   : > { %p1110_p2 = scmp.ne.s32.totalorder (!%p1109_p0), %s1107_s8, 0 }
  0x2e   : > { %221 = sbr.rel (%p1109_p0) target bundleno = 697 (0x2b9), region = 40 }
  0x35   : > { %842 = dma.done.wait (%p1110_p2), [#allocation5], 128  }
  0x36   : > { %844 = vsyncadd (%p1110_p2), [#allocation5], 4294967168  ;;  %vm263_vm0 = vcmask 1048480   ;;  %v874_v0 = vmov 0.0   ;;  %p251_p4 = scmp.lt.s32.totalorder %s863_s21, 1  ;;  %vm265_vm1 = vcmask 130048  }
  0x37   : > { %264 = vst.msk [vmem:[#allocation2] sm:$0xff] %vm263_vm0, %v874_v0  ;;  %665 = vmatprep.subr.mxu1 %v874_v0  ;;  %s875_s8 = smov 12   ;;  %s876_s13 = smov 10   ;;  %v879_v4 = vmov 0.0|0.0   ;;  %vm882_vm2 = vmmov 0   ;;  %v349_v5 = vld [vmem:[%s1096_s2] sm:$0xff] }
  0x38   : > { %s252_s9 = scalar_select %p251_p4, %s863_s21, 1  ;;  %670 = vmatprep.subr.bf16.mxu0 %v879_v4  ;;  %662 = vmatprep.mubr.msk.f32.mxu0 %vm882_vm2, %v874_v0  ;;  %v883_v6 = vmov 0   ;;  %vm287_vm3 = vcmask 80896   ;;  %vm299_vm4 = vcmask 64512   ;;  %vm275_vm5 = vcmask 97280   ;;  %v341_v35 = vld [vmem:[#allocation4] sm:$0xff] }
  0x39   : > { %s877_s14 = smov 8   ;;  %s878_s15 = smov 6   ;;  %667 = vmatprep.mubr.msk.f32.mxu1 %vm882_vm2, %v874_v0  ;;  %755 = vset.pattern.permute.xlu0 %v883_v6  ;;  %vm311_vm6 = vcmask 48128   ;;  %vm323_vm7 = vcmask 31744   ;;  %vm335_vm8 = vcmask 15360   ;;  %vm355_vm9 = vcmask 457728  }
  0x3a   : > { %s629_s10 = sshll.u32 %s252_s9, 3  ;;  %s880_s16 = smov 4   ;;  %756 = vset.pattern.permute.xlu1 %v883_v6  ;;  %v436_v36 = vld [vmem:[%s1098_s4] sm:$0xff] }
  0x3b   : > { %s257_s12 = scalar_lea.vmem %s1094_s0, %s629_s10  ;;  %s881_s17 = smov 2   ;;  %v435_v45 = vld [vmem:[%s1097_s3] sm:$0xff] }
  0x3c   : > { %v1015_v1 = vld [vmem:[%s257_s12] sm:$0xff]  ;;  %s248_s7 = sand.u32 1, %s855_s19   ;;  %s635_s12 = sshll.u32 %s863_s21, 7 }
  0x3d   : > { %266 = vst.msk [vmem:[#allocation2 + $0x8] sm:$0xff] %vm265_vm1, %v1015_v1  ;;  %s628_s11 = sshll.u32 %s248_s7, 3  ;;  %p1111_p10 = scmp.ne.s32.totalorder %s1104_s28, 0 }
  0x3e   : > { %v267_v2 = vld [vmem:[#allocation2] sm:$0xff]  ;;  %s884_s24 = smov [#allocation7]  }
  0x3f   : > { %271 = vrot.lane.b32.xlu0 %v267_v2, %s875_s8  ;;  %283 = vrot.lane.b32.xlu1 %v267_v2, %s876_s13  ;;  %s793_s25 = sshll.u32 %s884_s24, 4  ;;  %s794_s25 = int_to_ptr.vmem [resolvable:$false] %s793_s25 }
  0x40   : > { %s795_s27 = scalar_lea.vmem %s794_s25, 256 }
  0x43   : > { %295 = vrot.lane.b32.xlu0 %v267_v2, %s877_s14 }
  0x44   : > { %v280_v3 = vld [vmem:[#allocation2 + $0x8] sm:$0xff] }
  0x45   : > { %285 = vrot.lane.b32.xlu1 %v280_v3, %s876_s13  ;;  %340 = vst.msk [vmem:[#allocation3 + $0x30] sm:$0xff] %vm265_vm1, %v280_v3 }
  0x47   : > { %307 = vrot.lane.b32.xlu0 %v267_v2, %s878_s15 }
  0x49   : > { %297 = vrot.lane.b32.xlu1 %v280_v3, %s877_s14 }
  0x4b   : > { %273 = vrot.lane.b32.xlu0 %v280_v3, %s875_s8  ;;  %s250_s8 = scalar_lea.vmem [#allocation7], %s628_s11 }
  0x4c   : > { %v348_v34 = vld [vmem:[#allocation3 + $0x30] sm:$0xff]  ;;  %s538_s13 = sshll.u32 %s250_s8, 4  ;;  %s1048_s13 = int_to_ptr.vmem [resolvable:$true] %s538_s13 }
  0x4d   : > { %309 = vrot.lane.b32.xlu1 %v280_v3, %s878_s15  ;;  %s789_s21 = scalar_lea.vmem %s1048_s13, 128  ;;  %p796_p1 = scmp.lt.s32.totalorder %s1048_s13, %s794_s25 }
  0x4e   : > { %p790_p8 = scmp.ne.s32.totalorder %s1048_s13, %s789_s21  ;;  %p797_p3 = scmp.lt.s32.totalorder %s795_s27, %s789_s21 }
  0x4f   : > { %319 = vrot.lane.b32.xlu0 %v267_v2, %s880_s16 }
  0x50   : > { %p791_p11 = pnand %p790_p8, %p1111_p10  ;;  %p798_p5 = por %p797_p3, %p796_p1 }
  0x51   : > { %321 = vrot.lane.b32.xlu1 %v280_v3, %s880_s16  ;;  %s1046_s16 = scalar_lea.hbm %s1099_s5, %s635_s12 }
  0x52   : > { %p792_p13 = pneg %p791_p11 }
  0x53   : > { %331 = vrot.lane.b32.xlu0 %v267_v2, %s881_s17 }
  0x54   : > { %p799_p6 = pnand %p798_p5, %p792_p13 }
  0x55   : > { %333 = vrot.lane.b32.xlu1 %v280_v3, %s881_s17  ;;  %s524_s17 = scalar_lea.sflag [#allocation6], %s248_s7 }
  0x57   : > { %352 = vperm.xlu0 %755, %v349_v5  }
  0x59   : > { %439 = vperm.xlu1 %756, %v436_v36  }
  0xb1   : > { %v272_v7 = vpop.permute.xlu0 %271  ;;  %v284_v8 = vpop.permute.xlu1 %283 }
  0xb5   : > { %v296_v9 = vpop.permute.xlu0 %295 }
  0xb7   : > { %v286_v10 = vpop.permute.xlu1 %285 }
  0xb8   : > { %v288_v11 = vsel %vm287_vm3, %v284_v8, %v286_v10 }
  0xb9   : > { %v308_v12 = vpop.permute.xlu0 %307  ;;  %290 = vst.msk [vmem:[#allocation3 + $0x8] sm:$0xff] %vm265_vm1, %v288_v11 }
  0xbb   : > { %v298_v13 = vpop.permute.xlu1 %297 }
  0xbc   : > { %v300_v14 = vsel %vm299_vm4, %v296_v9, %v298_v13 }
  0xbd   : > { %v274_v15 = vpop.permute.xlu0 %273  ;;  %302 = vst.msk [vmem:[#allocation3 + $0x10] sm:$0xff] %vm265_vm1, %v300_v14 }
  0xbe   : > { %v276_v16 = vsel %vm275_vm5, %v272_v7, %v274_v15 }
  0xbf   : > { %278 = vst.msk [vmem:[#allocation3] sm:$0xff] %vm265_vm1, %v276_v16  ;;  %v310_v17 = vpop.permute.xlu1 %309 }
  0xc0   : > { %v312_v18 = vsel %vm311_vm6, %v308_v12, %v310_v17  ;;  %v343_v24 = vld [vmem:[#allocation3 + $0x8] sm:$0xff] }
  0xc1   : > { %v320_v19 = vpop.permute.xlu0 %319  ;;  %314 = vst.msk [vmem:[#allocation3 + $0x18] sm:$0xff] %vm265_vm1, %v312_v18 }
  0xc3   : > { %v322_v20 = vpop.permute.xlu1 %321 }
  0xc4   : > { %v324_v21 = vsel %vm323_vm7, %v320_v19, %v322_v20  ;;  %v344_v28 = vld [vmem:[#allocation3 + $0x10] sm:$0xff] }
  0xc5   : > { %326 = vst.msk [vmem:[#allocation3 + $0x20] sm:$0xff] %vm265_vm1, %v324_v21  ;;  %v332_v22 = vpop.permute.xlu0 %331 }
  0xc6   : > { %v342_v23 = vld [vmem:[#allocation3] sm:$0xff] }
  0xc7   : > { %v671_v25 = vpack.c.bf16 %v343_v24, %v342_v23  ;;  %v334_v26 = vpop.permute.xlu1 %333 }
  0xc8   : > { %v336_v27 = vsel %vm335_vm8, %v332_v22, %v334_v26  ;;  %v345_v29 = vld [vmem:[#allocation3 + $0x18] sm:$0xff] }
  0xc9   : > { %672 = vmatpush3.bf16.msra.mxu0 %v671_v25  ;;  %338 = vst.msk [vmem:[#allocation3 + $0x28] sm:$0xff] %vm265_vm1, %v336_v27  ;;  %v674_v30 = vpack.c.bf16 %v345_v29, %v344_v28 }
  0xca   : > { %673 = vmatprep.subr.bf16.mxu0 %v879_v4 }
  0xcc   : > { %v346_v31 = vld [vmem:[#allocation3 + $0x20] sm:$0xff] }
  0xcd   : > { %675 = vmatpush3.bf16.msra.mxu0 %v674_v30 }
  0xce   : > { %676 = vmatprep.subr.bf16.mxu0 %v879_v4 }
  0xd0   : > { %v347_v32 = vld [vmem:[#allocation3 + $0x28] sm:$0xff] }
  0xd1   : > { %v677_v33 = vpack.c.bf16 %v347_v32, %v346_v31 }
  0xd3   : > { %678 = vmatpush3.bf16.msra.mxu0 %v677_v33 }
  0xd4   : > { %660 = vmatprep.subr.mxu0 %v874_v0 }
  0xd6   : > { %v353_v37 = vpop.permute.xlu0 %352 }
  0xd7   : > { %661 = vmatpush3.msra.mxu0 %v348_v34 }
  0xd8   : > { %663 = vmatmul.mubr.msk.f32.vlgmr.msra.gmra.mrb[0].mxu0 %vm355_vm9, %v341_v35  ;;  %v440_v47 = vpop.permute.xlu1 %439 }
 0x1ab   : > { %v425_v38 = vpop.f32.mrb[0].mxu0 }
 0x1ac   : > { %v426_v39 = vadd.f32 %v425_v38, %v353_v37  ;;  %v664_v40 = vpop.f32.mrb[1].mxu0 }
 0x1ae   : > { %v430_v41 = vmin.f32 %v426_v39, 0.0  ;;  %vm429_vm10 = vcmp.gt.f32.partialorder %v426_v39, 0.0 }
 0x1b0   : > { %v431_v42 = vmul.f32 1.442695, %v430_v41 }
 0x1b2   : > { %757 = vpow2.f32 %v431_v42 }
 0x1bc   : > { %v758_v43 = vpop.eup %757 }
 0x1bd   : > { %v631_v44 = vadd.f32 -1.0, %v758_v43 }
 0x1bf   : > { %v434_v46 = vsel %vm429_vm10, %v426_v39, %v631_v44 }
 0x1c0   : > { %666 = vmatpush3.msra.mxu1 %v434_v46 }
 0x1c1   : > { %668 = vmatmul.mubr.msk.f32.vlgmr.msra.gmra.mrb[0].mxu1 %vm299_vm4, %v435_v45 }
 0x294   : > { %v511_v48 = vpop.f32.mrb[0].mxu1 }
 0x295   : > { %v512_v49 = vadd.f32 %v511_v48, %v440_v47  ;;  %v669_v50 = vpop.f32.mrb[1].mxu1 }
 0x297   : > { %v516_v51 = vmin.f32 %v512_v49, 0.0  ;;  %vm515_vm11 = vcmp.gt.f32.partialorder %v512_v49, 0.0 }
 0x299   : > { %v517_v52 = vmul.f32 1.442695, %v516_v51 }
 0x29b   : > { %759 = vpow2.f32 %v517_v52 }
 0x2a5   : > { %v760_v53 = vpop.eup %759 }
 0x2a6   : > { %v633_v54 = vadd.f32 -1.0, %v760_v53 }
 0x2a8   : > { %v520_v55 = vsel %vm515_vm11, %v512_v49, %v633_v54 }
 0x2a9   : > { %v521_v56 = vadd.f32 %v520_v55, %v1015_v1 }
 0x2ab   : > { %522 = vst.msk [vmem:[%s250_s8] sm:$0xff] %vm265_vm1, %v521_v56 }
 0x2ac   : > { %802 = shalt.err (!%p799_p6)
}
 0x2ad   : > { %s803_s29 = scalar_lea.hbm %s1046_s16, 128  ;;  %s807_s7 = scalar_lea.hbm %s1099_s5, 256 }
 0x2ae   : > { %p804_p7 = scmp.ne.s32.totalorder %s1046_s16, %s803_s29  ;;  %p808_p0 = scmp.lt.u32.totalorder %s1046_s16, %s1099_s5 }
 0x2af   : > { %p809_p2 = scmp.lt.u32.totalorder %s807_s7, %s803_s29  ;;  %p811_p8 = scmp.lt.u32.totalorder %s803_s29, %s1046_s16 }
 0x2b0   : > { %p805_p9 = pnand %p804_p7, %p1111_p10 }
 0x2b1   : > { %p810_p4 = por %p809_p2, %p808_p0 }
 0x2b2   : > { %p806_p12 = pneg %p805_p9 }
 0x2b3   : > { %p812_p11 = por %p811_p8, %p810_p4 }
 0x2b5   : > { %p813_p13 = pnand %p812_p11, %p806_p12 }
 0x2b7   : > { %816 = shalt.err (!%p813_p13)
}
 0x2b8   : > { %683 = dma.vmem_to_hbm [thread:$0]  (%p1111_p10), %s1048_s13, 128, %s1046_s16, %s524_s17  }
 0x2b9 PF: > { %p695_p1 = scmp.ge.s32.totalorder %s871_s23, 2  ;;  %s550_s8 = sand.u32 1, %s851_s18  }
 0x2ba   : > { %p1112_p3 = scmp.ne.s32.totalorder %s1105_s30, 0  ;;  %s551_s14 = scalar_lea.sflag [#allocation6], %s550_s8 }
 0x2bc   : > { %p690_p5 = pnand %p695_p1, %p1112_p3 }
 0x2be   : > { %846 = dma.done.wait (!%p690_p5), %s551_s14, 128  }
 0x2bf   : > { %848 = vsyncadd (!%p690_p5), %s551_s14, 4294967168  ;;  %s19_s23 = sadd.s32 1, %s871_s23   ;;  %s1113_s18 = smov %s855_s19 }
 0x2c0   : > { %p16_p6 = scmp.ge.s32.totalorder %s19_s23, 4   ;;  %s1114_s19 = smov %s859_s20 }
 0x2c1   : > { %s1115_s20 = smov %s968_s6  ;;  %s1116_s21 = smov %s867_s22 }
 0x2c2   : > { %s1117_s22 = smov %s1119_s26  ;;  %18 = sbr.rel (!%p16_p6) target bundleno = 5 (0x5), region = 84 }
 0x2c9   :  { %556 = vsyncpa [#allocation5], 1 }
 0x2ca   :  { %558 = vsyncpa [#allocation5 + $0x1], 1 }
 0x2cb   :  { %559 = vsyncpa [#allocation6], 1 }
 0x2cc   :  { %561 = vsyncpa [#allocation6 + $0x1], 1 }

</bundles_post_ra>
